<compile_context>
chip_gen: v7x
topology: tpu7x:2x2x1
jax: 0.10.0
libtpu: 0.0.40
codegen_flags: <defaults>
</compile_context>

<pallas_src>
import jax
import jax.numpy as jnp
from jax import lax
from jax.experimental import pallas as pl
from jax.experimental.pallas import tpu as pltpu


def _make_fp_kernel(num_layers, compute_dtype, prefold, packed_top3, idx_bits):
    approx_recip = jnp.dtype(compute_dtype) == jnp.dtype(jnp.bfloat16)

    def kernel(unknown_ref, known_t_ref, ufeat_ref, kfeat_ref, *rest):
        out_ref = rest[-1]
        layer_refs = rest[:-1]      # prefold: (W0b, b0, W1, b1, ...)
                                    # else   : (W0a, W0b, b0, W1, b1, ...)

        unk = unknown_ref[0]        # (TN, 3)   f32
        kn_t = known_t_ref[0]       # (3,  m)   f32  (lane-dense coords)
        ufeat = ufeat_ref[0]        # (C1, TN)  compute_dtype
        kfeat = kfeat_ref[0]        # (Ck, m)   compute_dtype (Ck = C2 or C0out)

        tn = unk.shape[0]
        m = kn_t.shape[1]

        # ---- three_nn: direct (u - k)^2, accumulated per coordinate (VPU only)
        dist2 = jnp.zeros((tn, m), jnp.float32)
        for c in range(3):
            diff = unk[:, c:c + 1] - kn_t[c:c + 1, :]                   # (TN, m)
            dist2 = dist2 + diff * diff

        col = lax.broadcasted_iota(jnp.int32, (tn, m), 1)

        # top-3 nearest neighbours with inverse-(squared)-distance weights,
        # folded into one dense (TN, m) matrix so the gather becomes a matmul.
        w_acc = jnp.zeros((tn, m), jnp.float32)
        w_sum = jnp.zeros((tn, 1), jnp.float32)

        if packed_top3:
            # Pack (quantized distance | column index) into one 32-bit key:
            # dist2 >= 0, so its f32 bit pattern is monotone; one min per pass
            # gives both dmin (quantized in the low idx_bits) and the argmin
            # (first-index on ties, same as the exact path).
            keep_mask = jnp.int32(-(1 << idx_bits))          # ~((1<<idx_bits)-1)
            low_mask = jnp.int32((1 << idx_bits) - 1)
            key = pltpu.bitcast(
                (pltpu.bitcast(dist2, jnp.int32) & keep_mask) | col,
                jnp.float32)                                             # (TN, m)
            masked = jnp.float32(3.0e38)     # > any real key, still finite
            for _ in range(3):
                kmin = jnp.min(key, axis=1, keepdims=True)               # (TN, 1)
                kmin_i = pltpu.bitcast(kmin, jnp.int32)
                idx = kmin_i & low_mask                                  # argmin
                dmin = pltpu.bitcast(kmin_i & keep_mask, jnp.float32)    # ~dmin
                onehot = col == idx                                      # (TN, m)
                w = 1.0 / (dmin + 1e-8)                                  # (TN, 1)
                w_acc = w_acc + jnp.where(onehot, w, 0.0)
                w_sum = w_sum + w
                key = jnp.where(onehot, masked, key)
        else:
            big = jnp.float32(1e30)
            d_work = dist2
            for _ in range(3):
                dmin = jnp.min(d_work, axis=1, keepdims=True)            # (TN, 1)
                idx = jnp.min(jnp.where(d_work == dmin, col, m),
                              axis=1, keepdims=True)                     # first argmin
                onehot = col == idx                                      # (TN, m)
                w = 1.0 / (dmin + 1e-8)                                  # (TN, 1)
                w_acc = w_acc + jnp.where(onehot, w, 0.0)
                w_sum = w_sum + w
                d_work = jnp.where(onehot, big, d_work)

        inv_wsum = pl.reciprocal(w_sum, approx=approx_recip)            # (TN, 1)

        # ---- three_interpolate: contract over m directly (no transpose),
        #      normalize on the small (Ck, TN) result (no (TN, m) divide).
        # NOTE: w_acc is cast to compute_dtype for the MXU; on bf16 this is a
        #       ~0.4% weight error (only matters for near-duplicate points).
        contr = lax.dot_general(
            kfeat, w_acc.astype(compute_dtype),
            dimension_numbers=(((1,), (1,)), ((), ())),
            preferred_element_type=jnp.float32)                         # (Ck, TN)

        # ---- SharedMLP (BN scale pre-folded into W; concat folded into layer 0)
        if prefold:
            # kfeat already holds Wk = W0a_scaled @ known_feats (host-folded);
            # the diagonal 1/sum(w) scaling over TN commutes with W0a.
            w0b_ref, b0_ref = layer_refs[0], layer_refs[1]
            x = contr * inv_wsum.T                                       # (C0out, TN)
            x = x + jnp.dot(w0b_ref[...], ufeat,
                            preferred_element_type=jnp.float32)
            x = jnp.maximum(x + b0_ref[...], 0.0)
            ptr = 2
        else:
            w0a_ref, w0b_ref, b0_ref = layer_refs[0], layer_refs[1], layer_refs[2]
            interp = (contr * inv_wsum.T).astype(compute_dtype)          # (C2, TN)
            x = (jnp.dot(w0a_ref[...], interp,
                         preferred_element_type=jnp.float32)
                 + jnp.dot(w0b_ref[...], ufeat,
                           preferred_element_type=jnp.float32))
            x = jnp.maximum(x + b0_ref[...], 0.0)                        # (C0out, TN)
            ptr = 3

        for _ in range(1, num_layers):
            w_ref, b_ref = layer_refs[ptr], layer_refs[ptr + 1]
            ptr += 2
            x = jnp.dot(w_ref[...], x.astype(compute_dtype),
                        preferred_element_type=jnp.float32)
            x = jnp.maximum(x + b_ref[...], 0.0)

        out_ref[0] = x.astype(out_ref.dtype)

    return kernel


def _vmem_budget():
    """Chip-aware scoped-VMEM limit (bytes)."""
    try:
        vmem_cap = int(pltpu.get_tpu_info().vmem_capacity_bytes)
    except Exception:
        vmem_cap = 64 << 20              # conservative (v7x-sized) fallback
    vmem_limit = min((vmem_cap * 3) // 4, 100 << 20)
    return vmem_cap, vmem_limit


def _select_tile_n(n, m, B, tile_n, vmem_cap, vmem_limit):
    """n-tile: full n when small, otherwise a 128-multiple bounded by VMEM."""
    if tile_n is not None:
        tn = n if n <= tile_n else tile_n
    else:
        # ~6 live f32 (tn, m) temporaries in the top-3 stage; keep them within
        # ~40% of the scoped limit so double-buffered tiles + output still fit.
        budget = (2 * vmem_limit) // 5
        tn_cap = max(128, ((budget // (6 * 4 * m)) // 128) * 128)
        default_tn = 1024 if vmem_cap >= (96 << 20) else 512
        tn = min(default_tn, tn_cap)
        if n <= tn:
            tn = n
            # v7x has 2 TensorCores: ensure the grid has >= 2 steps when B == 1
            # (only when each tile can stay >= 256 lanes for good MXU fill).
            if B == 1 and n >= 512 and n % 128 == 0:
                tn = max(256, ((n // 2) // 128) * 128)
    if tn < n:
        assert tn % 128 == 0, "n-tile must be a multiple of 128 lanes"
    return tn


def pointnet_fp_forward(unknown, known, unknow_feats, known_feats, layer_params,
                        *, compute_dtype=jnp.bfloat16, tile_n=None,
                        out_dtype=jnp.float32, packed_top3=None,
                        single_buffer_invariants=None):
    """PointnetFPModule.forward.

    unknown:      (B, n, 3) xyz of points to propagate to
    known:        (B, m, 3) xyz of points with known features
    unknow_feats: (B, C1, n)
    known_feats:  (B, C2, m)
    layer_params: list of (W (Cout, Cin), bn_scale (Cout, 1), bn_bias (Cout, 1))
                  for the SharedMLP; layer_params[0][0].shape[1] == C2 + C1.
    Returns (B, mlp[-1], n) in out_dtype (f32 by default, bf16 halves writeback).
    """
    B, n, _ = unknown.shape
    _, m, _ = known.shape
    C1 = unknow_feats.shape[1]
    C2 = known_feats.shape[1]
    num_layers = len(layer_params)
    out_ch = layer_params[-1][0].shape[0]
    c0out = layer_params[0][0].shape[0]
    assert layer_params[0][0].shape[1] == C1 + C2

    if packed_top3 is None:
        # packed min+argmin quantizes dmin's low mantissa bits -> bf16 path only.
        packed_top3 = jnp.dtype(compute_dtype) == jnp.dtype(jnp.bfloat16)
    idx_bits = max(1, (m - 1).bit_length())

    vmem_cap, vmem_limit = _vmem_budget()
    tn = _select_tile_n(n, m, B, tile_n, vmem_cap, vmem_limit)
    grid = (B, pl.cdiv(n, tn))

    # Fold BatchNorm scale into the conv weights; split layer 0 so the
    # concat([interp, ufeat]) buffer is never materialized.
    w0, s0, b0 = layer_params[0]
    w0f = (w0 * s0).astype(jnp.float32)
    w0a_f, w0b_f = w0f[:, :C2], w0f[:, C2:]

    # Pre-fold W0a into the known features when that shrinks the m-contraction.
    prefold = c0out <= C2
    if prefold:
        kfeat_in = jnp.einsum('oc,bcm->bom', w0a_f,
                              known_feats.astype(jnp.float32)
                              ).astype(compute_dtype)                # (B, C0out, m)
        param_arrays = [w0b_f.astype(compute_dtype), b0.astype(jnp.float32)]
        ck = c0out
    else:
        kfeat_in = known_feats.astype(compute_dtype)                 # (B, C2, m)
        param_arrays = [w0a_f.astype(compute_dtype),
                        w0b_f.astype(compute_dtype),
                        b0.astype(jnp.float32)]
        ck = C2
    for (w, s, b) in layer_params[1:]:
        param_arrays.append((w * s).astype(compute_dtype))
        param_arrays.append(b.astype(jnp.float32))

    known_t = jnp.swapaxes(known, 1, 2).astype(jnp.float32)   # (B, 3, m) lane-dense
    unknown = unknown.astype(jnp.float32)
    ufeat = unknow_feats.astype(compute_dtype)
    # TODO(synk): pre-transposing unknown to (B, 3, n) would make the per-tile
    #             coordinate DMA contiguous; skipped (DMA is not exposed here).

    # Inputs whose index_map is constant along the n-tile axis (known coords,
    # known/prefolded features, MLP params) only change at batch boundaries;
    # single-buffer them when double-buffering would eat a big VMEM slice.
    cd_bytes = jnp.dtype(compute_dtype).itemsize
    inv_bytes = (3 * m * 4 + ck * m * cd_bytes
                 + sum(int(p.size) * p.dtype.itemsize for p in param_arrays))
    if single_buffer_invariants is None:
        single_buffer_invariants = (2 * inv_bytes) > (vmem_limit // 4)

    def _inv_spec(shape, index_map):
        if single_buffer_invariants:
            return pl.BlockSpec(shape, index_map, pipeline_mode=pl.Buffered(1))
        return pl.BlockSpec(shape, index_map)

    in_specs = [
        pl.BlockSpec((1, tn, 3), lambda b, i: (b, i, 0)),      # unknown coords (tiled)
        _inv_spec((1, 3, m), lambda b, i: (b, 0, 0)),          # known coords (whole)
        pl.BlockSpec((1, C1, tn), lambda b, i: (b, 0, i)),     # features to keep (tiled)
        _inv_spec((1, ck, m), lambda b, i: (b, 0, 0)),         # (prefolded) known feats
    ]
    args = [unknown, known_t, ufeat, kfeat_in]
    for p in param_arrays:
        in_specs.append(_inv_spec(p.shape, lambda b, i: (0, 0)))
        args.append(p)

    return pl.pallas_call(
        _make_fp_kernel(num_layers, compute_dtype, prefold, packed_top3, idx_bits),
        out_shape=jax.ShapeDtypeStruct((B, out_ch, n), out_dtype),
        grid=grid,
        in_specs=in_specs,
        out_specs=pl.BlockSpec((1, out_ch, tn), lambda b, i: (b, 0, i)),
        compiler_params=pltpu.CompilerParams(
            dimension_semantics=("parallel", "parallel"),  # no cross-step accumulation
            vmem_limit_bytes=vmem_limit,
        ),
    )(*args)


def _reference(unknown, known, unknow_feats, known_feats, layer_params):
    """Pure-JAX (f32) reference with the module's original semantics."""
    B, n, _ = unknown.shape
    m = known.shape[1]
    diff = unknown[:, :, None, :] - known[:, None, :, :]            # (B, n, m, 3)
    dist2 = jnp.sum(diff * diff, axis=-1)                           # (B, n, m)
    col = jnp.arange(m)[None, None, :]
    d_work = dist2
    w_acc = jnp.zeros_like(dist2)
    w_sum = jnp.zeros((B, n, 1), jnp.float32)
    for _ in range(3):
        dmin = jnp.min(d_work, axis=-1, keepdims=True)
        idx = jnp.min(jnp.where(d_work == dmin, col, m), axis=-1, keepdims=True)
        onehot = col == idx
        w = 1.0 / (dmin + 1e-8)
        w_acc = w_acc + jnp.where(onehot, w, 0.0)
        w_sum = w_sum + w
        d_work = jnp.where(onehot, 1e30, d_work)
    weight = w_acc / w_sum
    interp = jnp.einsum('bcm,bnm->bcn', known_feats, weight)
    x = jnp.concatenate([interp, unknow_feats], axis=1)
    for (w, s, bias) in layer_params:
        x = jnp.einsum('oc,bcn->bon', w, x) * s[None] + bias[None]
        x = jnp.maximum(x, 0.0)
    return x


def _make_params(key, mlp):
    """Conv2d(k=1, bias=False) + BatchNorm2d (inference) per SharedMLP layer."""
    layer_params = []
    keys = jax.random.split(key, 4 * (len(mlp) - 1))
    for li in range(len(mlp) - 1):
        cin, cout = mlp[li], mlp[li + 1]
        k0, k1, k2, k3 = keys[4 * li:4 * li + 4]
        W = jax.random.normal(k0, (cout, cin), jnp.float32) * 0.1
        gamma = 1.0 + 0.1 * jax.random.normal(k1, (cout,), jnp.float32)
        beta = 0.1 * jax.random.normal(k2, (cout,), jnp.float32)
        running_mean = 0.05 * jax.random.normal(k3, (cout,), jnp.float32)
        running_var = jnp.ones((cout,), jnp.float32)
        scale = gamma / jnp.sqrt(running_var + 1e-5)
        bias = beta - running_mean * scale
        layer_params.append((W, scale.reshape(cout, 1), bias.reshape(cout, 1)))
    return layer_params


def _run_case(key, B, n, m, C1, C2, mlp_hidden, compute_dtype, tile_n,
              rtol, atol, name):
    mlp = [C1 + C2] + mlp_hidden
    k = jax.random.split(key, 5)
    unknown = jax.random.normal(k[0], (B, n, 3), jnp.float32)
    known = jax.random.normal(k[1], (B, m, 3), jnp.float32)
    unknow_feats = jax.random.normal(k[2], (B, C1, n), jnp.float32)
    known_feats = jax.random.normal(k[3], (B, C2, m), jnp.float32)
    layer_params = _make_params(k[4], mlp)

    out = pointnet_fp_forward(unknown, known, unknow_feats, known_feats,
                              layer_params, compute_dtype=compute_dtype,
                              tile_n=tile_n)
    out = jax.block_until_ready(out)
    ref = _reference(unknown, known, unknow_feats, known_feats, layer_params)
    assert out.shape == (B, mlp[-1], n), (name, out.shape)
    err = float(jnp.max(jnp.abs(out - ref)))
    assert jnp.allclose(out, ref, rtol=rtol, atol=atol), (name, err)


if __name__ == "__main__":
    key = jax.random.PRNGKey(0)
    k1, k2, k3, k4, k5 = jax.random.split(key, 5)

    # 1) f32 compute path, exact top-3, no prefold (mlp[1] > C2), single tile.
    _run_case(k1, B=2, n=16, m=8, C1=4, C2=6, mlp_hidden=[32, 16],
              compute_dtype=jnp.float32, tile_n=None,
              rtol=1e-4, atol=1e-4, name="f32")

    # 2) f32 path exercising the n-tiling (grid = (1, 2), TN = 128).
    _run_case(k2, B=1, n=256, m=64, C1=16, C2=32, mlp_hidden=[64, 32],
              compute_dtype=jnp.float32, tile_n=128,
              rtol=1e-4, atol=1e-4, name="f32-tiled")

    # 3) f32 path with W0a pre-folded into known_feats (mlp[1] <= C2).
    _run_case(k3, B=2, n=16, m=8, C1=4, C2=16, mlp_hidden=[8, 16],
              compute_dtype=jnp.float32, tile_n=None,
              rtol=1e-4, atol=1e-4, name="f32-prefold")

    # 4) bf16 matmul operands + packed min/argmin top-3, looser tolerance.
    _run_case(k4, B=2, n=16, m=8, C1=4, C2=6, mlp_hidden=[32, 16],
              compute_dtype=jnp.bfloat16, tile_n=None,
              rtol=3e-2, atol=3e-2, name="bf16")

    # 5) bf16 + packed top-3 + prefold + n-tiling all together.
    _run_case(k5, B=1, n=256, m=64, C1=16, C2=64, mlp_hidden=[32, 32],
              compute_dtype=jnp.bfloat16, tile_n=128,
              rtol=3e-2, atol=3e-2, name="bf16-tiled-prefold")

    print("KERNEL_OK")
</pallas_src>

<mosaic_0001>
module attributes {stable_mosaic.version = 11 : i64} {
  func.func @kernel(%arg0: i32, %arg1: i32, %arg2: memref<1x16x3xf32, #tpu.memory_space<vmem>>, %arg3: memref<1x3x8xf32, #tpu.memory_space<vmem>>, %arg4: memref<1x4x16xf32, #tpu.memory_space<vmem>>, %arg5: memref<1x6x8xf32, #tpu.memory_space<vmem>>, %arg6: memref<32x6xf32, #tpu.memory_space<vmem>>, %arg7: memref<32x4xf32, #tpu.memory_space<vmem>>, %arg8: memref<32x1xf32, #tpu.memory_space<vmem>>, %arg9: memref<16x32xf32, #tpu.memory_space<vmem>>, %arg10: memref<16x1xf32, #tpu.memory_space<vmem>>, %arg11: memref<1x16x16xf32, #tpu.memory_space<vmem>>) attributes {dimension_semantics = [#tpu.dimension_semantics<parallel>, #tpu.dimension_semantics<parallel>], iteration_bounds = array<i64: 2, 1>, scalar_prefetch = 0 : i64, scratch_operands = 0 : i64, tpu.core_type = #tpu.core_type<tc>, window_params = [{transform_indices = @transform_0, window_bounds = array<i64: 1, 16, 3>}, {transform_indices = @transform_1, window_bounds = array<i64: 1, 3, 8>}, {transform_indices = @transform_2, window_bounds = array<i64: 1, 4, 16>}, {transform_indices = @transform_3, window_bounds = array<i64: 1, 6, 8>}, {pipeline_mode = #tpu.pipeline_mode<synchronous>, transform_indices = @transform_4, window_bounds = array<i64: 32, 6>}, {pipeline_mode = #tpu.pipeline_mode<synchronous>, transform_indices = @transform_5, window_bounds = array<i64: 32, 4>}, {pipeline_mode = #tpu.pipeline_mode<synchronous>, transform_indices = @transform_6, window_bounds = array<i64: 32, 1>}, {pipeline_mode = #tpu.pipeline_mode<synchronous>, transform_indices = @transform_7, window_bounds = array<i64: 16, 32>}, {pipeline_mode = #tpu.pipeline_mode<synchronous>, transform_indices = @transform_8, window_bounds = array<i64: 16, 1>}, {transform_indices = @transform_9, window_bounds = array<i64: 1, 16, 16>}]} {
    %c0 = arith.constant 0 : index
    %c0_0 = arith.constant 0 : index
    %c0_1 = arith.constant 0 : index
    %0 = vector.load %arg2[%c0, %c0_0, %c0_1] : memref<1x16x3xf32, #tpu.memory_space<vmem>>, vector<1x16x3xf32>
    %1 = vector.shape_cast %0 : vector<1x16x3xf32> to vector<16x3xf32>
    %c0_2 = arith.constant 0 : index
    %c0_3 = arith.constant 0 : index
    %c0_4 = arith.constant 0 : index
    %2 = vector.load %arg3[%c0_2, %c0_3, %c0_4] : memref<1x3x8xf32, #tpu.memory_space<vmem>>, vector<1x3x8xf32>
    %3 = vector.shape_cast %2 : vector<1x3x8xf32> to vector<3x8xf32>
    %c0_5 = arith.constant 0 : index
    %c0_6 = arith.constant 0 : index
    %c0_7 = arith.constant 0 : index
    %4 = vector.load %arg4[%c0_5, %c0_6, %c0_7] : memref<1x4x16xf32, #tpu.memory_space<vmem>>, vector<1x4x16xf32>
    %5 = vector.shape_cast %4 : vector<1x4x16xf32> to vector<4x16xf32>
    %c0_8 = arith.constant 0 : index
    %c0_9 = arith.constant 0 : index
    %c0_10 = arith.constant 0 : index
    %6 = vector.load %arg5[%c0_8, %c0_9, %c0_10] : memref<1x6x8xf32, #tpu.memory_space<vmem>>, vector<1x6x8xf32>
    %7 = vector.shape_cast %6 : vector<1x6x8xf32> to vector<6x8xf32>
    %cst = arith.constant 0.000000e+00 : f32
    %8 = vector.broadcast %cst : f32 to vector<16x8xf32>
    %9 = vector.extract_strided_slice %1 {offsets = [0, 0], sizes = [16, 1], strides = [1, 1]} : vector<16x3xf32> to vector<16x1xf32>
    %10 = vector.extract_strided_slice %3 {offsets = [0, 0], sizes = [1, 8], strides = [1, 1]} : vector<3x8xf32> to vector<1x8xf32>
    %11 = vector.broadcast %9 : vector<16x1xf32> to vector<16x8xf32>
    %12 = vector.broadcast %10 : vector<1x8xf32> to vector<16x8xf32>
    %13 = arith.subf %11, %12 : vector<16x8xf32>
    %14 = arith.mulf %13, %13 : vector<16x8xf32>
    %15 = arith.addf %8, %14 : vector<16x8xf32>
    %16 = vector.extract_strided_slice %1 {offsets = [0, 1], sizes = [16, 1], strides = [1, 1]} : vector<16x3xf32> to vector<16x1xf32>
    %17 = vector.extract_strided_slice %3 {offsets = [1, 0], sizes = [1, 8], strides = [1, 1]} : vector<3x8xf32> to vector<1x8xf32>
    %18 = vector.broadcast %16 : vector<16x1xf32> to vector<16x8xf32>
    %19 = vector.broadcast %17 : vector<1x8xf32> to vector<16x8xf32>
    %20 = arith.subf %18, %19 : vector<16x8xf32>
    %21 = arith.mulf %20, %20 : vector<16x8xf32>
    %22 = arith.addf %15, %21 : vector<16x8xf32>
    %23 = vector.extract_strided_slice %1 {offsets = [0, 2], sizes = [16, 1], strides = [1, 1]} : vector<16x3xf32> to vector<16x1xf32>
    %24 = vector.extract_strided_slice %3 {offsets = [2, 0], sizes = [1, 8], strides = [1, 1]} : vector<3x8xf32> to vector<1x8xf32>
    %25 = vector.broadcast %23 : vector<16x1xf32> to vector<16x8xf32>
    %26 = vector.broadcast %24 : vector<1x8xf32> to vector<16x8xf32>
    %27 = arith.subf %25, %26 : vector<16x8xf32>
    %28 = arith.mulf %27, %27 : vector<16x8xf32>
    %29 = arith.addf %22, %28 : vector<16x8xf32>
    %30 = tpu.iota {dimensions = array<i32: 1>} : vector<16x8xi32>
    %cst_11 = arith.constant 0.000000e+00 : f32
    %31 = vector.broadcast %cst_11 : f32 to vector<16x8xf32>
    %cst_12 = arith.constant 0.000000e+00 : f32
    %32 = vector.broadcast %cst_12 : f32 to vector<16x1xf32>
    %cst_13 = arith.constant dense<0x7F800000> : vector<16xf32>
    %33 = vector.multi_reduction <minimumf>, %29, %cst_13 [1] : vector<16x8xf32> to vector<16xf32>
    %34 = vector.shape_cast %33 : vector<16xf32> to vector<16x1xf32>
    %35 = vector.broadcast %34 : vector<16x1xf32> to vector<16x8xf32>
    %36 = arith.cmpf oeq, %29, %35 : vector<16x8xf32>
    %c8_i32 = arith.constant 8 : i32
    %37 = vector.broadcast %c8_i32 : i32 to vector<16x8xi32>
    %38 = arith.select %36, %30, %37 : vector<16x8xi1>, vector<16x8xi32>
    %cst_14 = arith.constant dense<2147483647> : vector<16xi32>
    %39 = vector.multi_reduction <minsi>, %38, %cst_14 [1] : vector<16x8xi32> to vector<16xi32>
    %40 = vector.shape_cast %39 : vector<16xi32> to vector<16x1xi32>
    %41 = vector.broadcast %40 : vector<16x1xi32> to vector<16x8xi32>
    %42 = arith.cmpi eq, %30, %41 : vector<16x8xi32>
    %cst_15 = arith.constant 9.99999993E-9 : f32
    %43 = vector.broadcast %cst_15 : f32 to vector<16x1xf32>
    %44 = arith.addf %34, %43 : vector<16x1xf32>
    %cst_16 = arith.constant 1.000000e+00 : f32
    %45 = vector.broadcast %cst_16 : f32 to vector<16x1xf32>
    %46 = arith.divf %45, %44 : vector<16x1xf32>
    %cst_17 = arith.constant 0.000000e+00 : f32
    %47 = vector.shape_cast %46 : vector<16x1xf32> to vector<16x1xf32>
    %48 = vector.broadcast %47 : vector<16x1xf32> to vector<16x8xf32>
    %49 = vector.broadcast %cst_17 : f32 to vector<16x8xf32>
    %50 = arith.select %42, %48, %49 : vector<16x8xi1>, vector<16x8xf32>
    %51 = arith.addf %31, %50 : vector<16x8xf32>
    %52 = arith.addf %32, %46 : vector<16x1xf32>
    %cst_18 = arith.constant 1.000000e+30 : f32
    %53 = vector.broadcast %cst_18 : f32 to vector<16x8xf32>
    %54 = arith.select %42, %53, %29 : vector<16x8xi1>, vector<16x8xf32>
    %cst_19 = arith.constant dense<0x7F800000> : vector<16xf32>
    %55 = vector.multi_reduction <minimumf>, %54, %cst_19 [1] : vector<16x8xf32> to vector<16xf32>
    %56 = vector.shape_cast %55 : vector<16xf32> to vector<16x1xf32>
    %57 = vector.broadcast %56 : vector<16x1xf32> to vector<16x8xf32>
    %58 = arith.cmpf oeq, %54, %57 : vector<16x8xf32>
    %c8_i32_20 = arith.constant 8 : i32
    %59 = vector.broadcast %c8_i32_20 : i32 to vector<16x8xi32>
    %60 = arith.select %58, %30, %59 : vector<16x8xi1>, vector<16x8xi32>
    %cst_21 = arith.constant dense<2147483647> : vector<16xi32>
    %61 = vector.multi_reduction <minsi>, %60, %cst_21 [1] : vector<16x8xi32> to vector<16xi32>
    %62 = vector.shape_cast %61 : vector<16xi32> to vector<16x1xi32>
    %63 = vector.broadcast %62 : vector<16x1xi32> to vector<16x8xi32>
    %64 = arith.cmpi eq, %30, %63 : vector<16x8xi32>
    %cst_22 = arith.constant 9.99999993E-9 : f32
    %65 = vector.broadcast %cst_22 : f32 to vector<16x1xf32>
    %66 = arith.addf %56, %65 : vector<16x1xf32>
    %cst_23 = arith.constant 1.000000e+00 : f32
    %67 = vector.broadcast %cst_23 : f32 to vector<16x1xf32>
    %68 = arith.divf %67, %66 : vector<16x1xf32>
    %cst_24 = arith.constant 0.000000e+00 : f32
    %69 = vector.shape_cast %68 : vector<16x1xf32> to vector<16x1xf32>
    %70 = vector.broadcast %69 : vector<16x1xf32> to vector<16x8xf32>
    %71 = vector.broadcast %cst_24 : f32 to vector<16x8xf32>
    %72 = arith.select %64, %70, %71 : vector<16x8xi1>, vector<16x8xf32>
    %73 = arith.addf %51, %72 : vector<16x8xf32>
    %74 = arith.addf %52, %68 : vector<16x1xf32>
    %cst_25 = arith.constant 1.000000e+30 : f32
    %75 = vector.broadcast %cst_25 : f32 to vector<16x8xf32>
    %76 = arith.select %64, %75, %54 : vector<16x8xi1>, vector<16x8xf32>
    %cst_26 = arith.constant dense<0x7F800000> : vector<16xf32>
    %77 = vector.multi_reduction <minimumf>, %76, %cst_26 [1] : vector<16x8xf32> to vector<16xf32>
    %78 = vector.shape_cast %77 : vector<16xf32> to vector<16x1xf32>
    %79 = vector.broadcast %78 : vector<16x1xf32> to vector<16x8xf32>
    %80 = arith.cmpf oeq, %76, %79 : vector<16x8xf32>
    %c8_i32_27 = arith.constant 8 : i32
    %81 = vector.broadcast %c8_i32_27 : i32 to vector<16x8xi32>
    %82 = arith.select %80, %30, %81 : vector<16x8xi1>, vector<16x8xi32>
    %cst_28 = arith.constant dense<2147483647> : vector<16xi32>
    %83 = vector.multi_reduction <minsi>, %82, %cst_28 [1] : vector<16x8xi32> to vector<16xi32>
    %84 = vector.shape_cast %83 : vector<16xi32> to vector<16x1xi32>
    %85 = vector.broadcast %84 : vector<16x1xi32> to vector<16x8xi32>
    %86 = arith.cmpi eq, %30, %85 : vector<16x8xi32>
    %cst_29 = arith.constant 9.99999993E-9 : f32
    %87 = vector.broadcast %cst_29 : f32 to vector<16x1xf32>
    %88 = arith.addf %78, %87 : vector<16x1xf32>
    %cst_30 = arith.constant 1.000000e+00 : f32
    %89 = vector.broadcast %cst_30 : f32 to vector<16x1xf32>
    %90 = arith.divf %89, %88 : vector<16x1xf32>
    %cst_31 = arith.constant 0.000000e+00 : f32
    %91 = vector.shape_cast %90 : vector<16x1xf32> to vector<16x1xf32>
    %92 = vector.broadcast %91 : vector<16x1xf32> to vector<16x8xf32>
    %93 = vector.broadcast %cst_31 : f32 to vector<16x8xf32>
    %94 = arith.select %86, %92, %93 : vector<16x8xi1>, vector<16x8xf32>
    %95 = arith.addf %73, %94 : vector<16x8xf32>
    %96 = arith.addf %74, %90 : vector<16x1xf32>
    %97 = tpu.reciprocal %96 : vector<16x1xf32> -> vector<16x1xf32>
    %cst_32 = arith.constant dense<0.000000e+00> : vector<6x16xf32>
    %98 = tpu.matmul %7, %95, %cst_32 {dimension_numbers = #tpu.dot_dimension_numbers<[1], [1], [0], [0], [0, 0, 1, 0], [], []>} : vector<6x8xf32>, vector<16x8xf32>, vector<6x16xf32> -> vector<6x16xf32>
    %99 = tpu.transpose %97, [1, 0] : vector<16x1xf32> -> vector<1x16xf32>
    %100 = vector.broadcast %99 : vector<1x16xf32> to vector<6x16xf32>
    %101 = arith.mulf %98, %100 : vector<6x16xf32>
    %c0_33 = arith.constant 0 : index
    %c0_34 = arith.constant 0 : index
    %102 = vector.load %arg6[%c0_33, %c0_34] : memref<32x6xf32, #tpu.memory_space<vmem>>, vector<32x6xf32>
    %cst_35 = arith.constant dense<0.000000e+00> : vector<32x16xf32>
    %103 = tpu.matmul %102, %101, %cst_35 {dimension_numbers = #tpu.dot_dimension_numbers<[1], [0], [0], [1], [0, 0, 1, 1], [], []>} : vector<32x6xf32>, vector<6x16xf32>, vector<32x16xf32> -> vector<32x16xf32>
    %c0_36 = arith.constant 0 : index
    %c0_37 = arith.constant 0 : index
    %104 = vector.load %arg7[%c0_36, %c0_37] : memref<32x4xf32, #tpu.memory_space<vmem>>, vector<32x4xf32>
    %cst_38 = arith.constant dense<0.000000e+00> : vector<32x16xf32>
    %105 = tpu.matmul %104, %5, %cst_38 {dimension_numbers = #tpu.dot_dimension_numbers<[1], [0], [0], [1], [0, 0, 1, 1], [], []>} : vector<32x4xf32>, vector<4x16xf32>, vector<32x16xf32> -> vector<32x16xf32>
    %106 = arith.addf %103, %105 : vector<32x16xf32>
    %c0_39 = arith.constant 0 : index
    %c0_40 = arith.constant 0 : index
    %107 = vector.load %arg8[%c0_39, %c0_40] : memref<32x1xf32, #tpu.memory_space<vmem>>, vector<32x1xf32>
    %108 = vector.broadcast %107 : vector<32x1xf32> to vector<32x16xf32>
    %109 = arith.addf %106, %108 : vector<32x16xf32>
    %cst_41 = arith.constant 0.000000e+00 : f32
    %110 = vector.broadcast %cst_41 : f32 to vector<32x16xf32>
    %111 = arith.maximumf %109, %110 : vector<32x16xf32>
    %c0_42 = arith.constant 0 : index
    %c0_43 = arith.constant 0 : index
    %112 = vector.load %arg9[%c0_42, %c0_43] : memref<16x32xf32, #tpu.memory_space<vmem>>, vector<16x32xf32>
    %cst_44 = arith.constant dense<0.000000e+00> : vector<16x16xf32>
    %113 = tpu.matmul %112, %111, %cst_44 {dimension_numbers = #tpu.dot_dimension_numbers<[1], [0], [0], [1], [0, 0, 1, 1], [], []>} : vector<16x32xf32>, vector<32x16xf32>, vector<16x16xf32> -> vector<16x16xf32>
    %c0_45 = arith.constant 0 : index
    %c0_46 = arith.constant 0 : index
    %114 = vector.load %arg10[%c0_45, %c0_46] : memref<16x1xf32, #tpu.memory_space<vmem>>, vector<16x1xf32>
    %115 = vector.broadcast %114 : vector<16x1xf32> to vector<16x16xf32>
    %116 = arith.addf %113, %115 : vector<16x16xf32>
    %cst_47 = arith.constant 0.000000e+00 : f32
    %117 = vector.broadcast %cst_47 : f32 to vector<16x16xf32>
    %118 = arith.maximumf %116, %117 : vector<16x16xf32>
    %c0_48 = arith.constant 0 : index
    %c0_49 = arith.constant 0 : index
    %c0_50 = arith.constant 0 : index
    %119 = vector.load %arg11[%c0_48, %c0_49, %c0_50] : memref<1x16x16xf32, #tpu.memory_space<vmem>>, vector<1x16x16xf32>
    %120 = vector.shape_cast %119 : vector<1x16x16xf32> to vector<16x16xf32>
    %121 = vector.shape_cast %118 : vector<16x16xf32> to vector<1x16x16xf32>
    tpu.vector_store %arg11[%c0_48, %c0_49, %c0_50], %121 {strides = array<i32>} : memref<1x16x16xf32, #tpu.memory_space<vmem>>, vector<1x16x16xf32>,
    return
  }
  func.func @transform_0(%arg0: i32, %arg1: i32) -> (i32, i32, i32) {
    %c0_i32 = arith.constant 0 : i32
    %c0_i32_0 = arith.constant 0 : i32
    return %arg0, %arg1, %c0_i32 : i32, i32, i32
  }
  func.func @transform_1(%arg0: i32, %arg1: i32) -> (i32, i32, i32) {
    %c0_i32 = arith.constant 0 : i32
    %c0_i32_0 = arith.constant 0 : i32
    %c0_i32_1 = arith.constant 0 : i32
    return %arg0, %c0_i32, %c0_i32_0 : i32, i32, i32
  }
  func.func @transform_2(%arg0: i32, %arg1: i32) -> (i32, i32, i32) {
    %c0_i32 = arith.constant 0 : i32
    %c0_i32_0 = arith.constant 0 : i32
    return %arg0, %c0_i32, %arg1 : i32, i32, i32
  }
  func.func @transform_3(%arg0: i32, %arg1: i32) -> (i32, i32, i32) {
    %c0_i32 = arith.constant 0 : i32
    %c0_i32_0 = arith.constant 0 : i32
    %c0_i32_1 = arith.constant 0 : i32
    return %arg0, %c0_i32, %c0_i32_0 : i32, i32, i32
  }
  func.func @transform_4(%arg0: i32, %arg1: i32) -> (i32, i32) {
    %c0_i32 = arith.constant 0 : i32
    %c0_i32_0 = arith.constant 0 : i32
    %c0_i32_1 = arith.constant 0 : i32
    return %c0_i32, %c0_i32_0 : i32, i32
  }
  func.func @transform_5(%arg0: i32, %arg1: i32) -> (i32, i32) {
    %c0_i32 = arith.constant 0 : i32
    %c0_i32_0 = arith.constant 0 : i32
    %c0_i32_1 = arith.constant 0 : i32
    return %c0_i32, %c0_i32_0 : i32, i32
  }
  func.func @transform_6(%arg0: i32, %arg1: i32) -> (i32, i32) {
    %c0_i32 = arith.constant 0 : i32
    %c0_i32_0 = arith.constant 0 : i32
    %c0_i32_1 = arith.constant 0 : i32
    return %c0_i32, %c0_i32_0 : i32, i32
  }
  func.func @transform_7(%arg0: i32, %arg1: i32) -> (i32, i32) {
    %c0_i32 = arith.constant 0 : i32
    %c0_i32_0 = arith.constant 0 : i32
    %c0_i32_1 = arith.constant 0 : i32
    return %c0_i32, %c0_i32_0 : i32, i32
  }
  func.func @transform_8(%arg0: i32, %arg1: i32) -> (i32, i32) {
    %c0_i32 = arith.constant 0 : i32
    %c0_i32_0 = arith.constant 0 : i32
    %c0_i32_1 = arith.constant 0 : i32
    return %c0_i32, %c0_i32_0 : i32, i32
  }
  func.func @transform_9(%arg0: i32, %arg1: i32) -> (i32, i32, i32) {
    %c0_i32 = arith.constant 0 : i32
    %c0_i32_0 = arith.constant 0 : i32
    return %arg0, %c0_i32, %arg1 : i32, i32, i32
  }
}

</mosaic_0001>

<bundles_post_ra>
// kernel: tpu_custom_call.1
= control target key start
LH: loop header
LB: loop body
LE: loop exit
PB: predicated region body
PF: predicated region fallthrough
CT: control target
= control target key end

     0   :  { %14 = vsyncpa [#allocation3], 0  ;;  %s1828_s0 = inlined_call_operand.vmem [shape: f32[2,16,3], index: 0, kind: input, shape index: {}]   ;;  %s1829_s1 = inlined_call_operand.vmem [shape: f32[2,3,8], index: 1, kind: input, shape index: {}]   ;;  %s1830_s2 = inlined_call_operand.vmem [shape: f32[2,4,16], index: 2, kind: input, shape index: {}]   ;;  %s1831_s3 = inlined_call_operand.vmem [shape: f32[2,6,8], index: 3, kind: input, shape index: {}]   ;;  %s1832_s4 = inlined_call_operand.vmem [shape: f32[32,6], index: 4, kind: input, shape index: {}]   ;;  %s1833_s5 = inlined_call_operand.vmem [shape: f32[32,4], index: 5, kind: input, shape index: {}]   ;;  %s1834_s6 = inlined_call_operand.vmem [shape: f32[32,1], index: 6, kind: input, shape index: {}]   ;;  %s1835_s7 = inlined_call_operand.vmem [shape: f32[16,32], index: 7, kind: input, shape index: {}]   ;;  %s1836_s8 = inlined_call_operand.vmem [shape: f32[16,1], index: 8, kind: input, shape index: {}]   ;;  %s1837_s9 = inlined_call_operand.hbm [shape: f32[2,16,16], index: 9, kind: output, shape index: {}]  }
   0x1   :  { %16 = vsyncpa [#allocation3 + $0x1], 0  ;;  %s1574_s30 = smov 0   ;;  %s1576_s10 = smov 0  }
   0x2   :  { %s1578_s11 = smov 0   ;;  %s1580_s12 = smov 0  }
   0x3   :  { %s1582_s13 = smov 0   ;;  %s1584_s14 = smov 0  }
   0x4 LB: > { %s1248_s15 = sadd.s32 4294967295, %s1513_s14   ;;  %s1249_s16 = sadd.s32 4294967294, %s1513_s14   ;;  %s1513_s14 = sphi %s1584_s14, %s22_s14   ;;  %s1509_s13 = sphi %s1582_s13, %s1844_s13   ;;  %s1505_s12 = sphi %s1580_s12, %s1843_s12   ;;  %s1501_s11 = sphi %s1578_s11, %s1842_s11   ;;  %s1497_s10 = sphi %s1576_s10, %s1841_s10   ;;  %s1493_s30 = sphi %s1574_s30, %s1840_s30  }
   0x5   : > { %s34_s17 = sadd.s32 1, %s1509_s13  ;;  %s256_s18 = sadd.s32 1, %s1501_s11 }
   0x6   : > { %p36_p0 = scmp.ge.s32.totalorder %s34_s17, 2  ;;  %p266_p1 = scmp.ne.s32.totalorder %s1501_s11, %s1497_s10 }
   0x7   : > { %p267_p2 = scmp.eq.s32.totalorder %s1248_s15, 1  ;;  %p272_p3 = scmp.ne.s32.totalorder %s1497_s10, %s1493_s30 }
   0x8   : > { %s1846_s17 = smov (%p36_p0, %s34_s17), 0  ;;  %p273_p5 = scmp.eq.s32.totalorder %s1249_s16, 1 }
   0x9   : > { %p1614_p4 = por %p267_p2, %p266_p1  ;;  %s251_s20 = ssub.s32 %s1509_s13, %s1846_s17 }
   0xa   : > { %p1252_p6 = scmp.ge.s32.totalorder %s1513_s14, 1  ;;  %p254_p7 = scmp.eq.s32.totalorder %s251_s20, 0 }
   0xb   : > { %p1621_p8 = por %p273_p5, %p272_p3  ;;  %p343_p9 = scmp.lt.s32.totalorder %s1513_s14, 3 }
   0xc   : > { %s1627_s22 = scalar_select %p254_p7, %s1501_s11, %s256_s18  }
   0xd   : > { %p344_p10 = pnand %p1252_p6, %p343_p9 }
   0xe   : > { %p399_p11 = scmp.lt.s32.totalorder (!%p344_p10), %s1505_s12, 1  ;;  %v1515_v0 = vmov (!%p344_p10), 1   ;;  %v1516_v1 = vmov (!%p344_p10), 0   ;;  %v1517_v4 = vmov (!%p344_p10), 2   ;;  %v438_v5 = vlaneseq (!%p344_p10)  ;;  %s395_s29 = sand.u32 (!%p344_p10), 1, %s1497_s10  }
   0xf   : > { %347 = sbr.rel (%p344_p10) target bundleno = 2182 (0x886), region = 56  ;;  %1414 = vset.pattern.permute.xlu1 (!%p344_p10), %v1515_v0  ;;  %1413 = vset.pattern.permute.xlu0 (!%p344_p10), %v1516_v1  ;;  %vm486_vm0 = vcmask (!%p344_p10), 64512   ;;  %s1782_s26 = scalar_lea.sflag (!%p344_p10), [#allocation3], %s395_s29 }
  0x10   : > { %v1640_v6 = vshrl.u32 (!%p344_p10), %v438_v5, 7  ;;  %v1654_v38 = vand.u32 (!%p344_p10), 127, %v438_v5 }
  0x12   : > { %v458_v7 = vsub.s32 (!%p344_p10), 1, %v1640_v6  ;;  %v440_v8 = vsub.s32 (!%p344_p10), 0, %v1640_v6  ;;  %v476_v14 = vsub.s32 (!%p344_p10), 2, %v1640_v6  ;;  %v774_v6 = vld [vmem:[%s1832_s4 + $0x18] sm:$0xff] (!%p344_p10) }
  0x16   : > { %s1632_s23 = scalar_select %p399_p11, %s1505_s12, 1 }
  0x18   : > { %s1279_s24 = sshll.u32 %s1632_s23, 4  ;;  %s1256_s28 = sshll.u32 %s1632_s23, 2 }
  0x19   : > { %s406_s27 = scalar_lea.vmem %s1828_s0, %s1279_s24  ;;  %s411_s16 = scalar_lea.vmem %s1829_s1, %s1256_s28 }
  0x1a   : > { %v423_v2 = vld [vmem:[%s406_s27] sm:$0xff]  ;;  %v424_v3 = vld [vmem:[%s406_s27 + $0x8] sm:$0xff]  ;;  %s418_s24 = scalar_lea.vmem %s1830_s2, %s1256_s28  ;;  %s1258_s28 = sshll.u32 %s1632_s23, 3 }
  0x1b   : > { %449 = vperm.xlu1 %1414, %v423_v2   ;;  %430 = vperm.xlu0 %1413, %v423_v2   ;;  %v425_v9 = vld [vmem:[%s411_s16] sm:$0x7]  ;;  %s422_s18 = scalar_lea.vmem %s1831_s3, %s1258_s28  ;;  %s1253_s28 = sshll.u32 %s395_s29, 4 }
  0x1c   : > { %v459_v10 = vrot.slane %v425_v9, %v458_v7  ;;  %v441_v12 = vrot.slane %v425_v9, %v440_v8  ;;  %v477_v21 = vrot.slane %v425_v9, %v476_v14  ;;  %s397_s15 = scalar_lea.vmem [#allocation2], %s1253_s28  ;;  %s1521_s23 = smov [#allocation2]  }
  0x1d   : > { %s1131_s16 = sshll.u32 %s397_s15, 4  ;;  %s1439_s27 = sshll.u32 %s1521_s23, 4  ;;  %s1775_s16 = int_to_ptr.vmem [resolvable:$true] %s1131_s16  ;;  %s1440_s27 = int_to_ptr.vmem [resolvable:$false] %s1439_s27 }
  0x1e   : > { %s1441_s28 = scalar_lea.vmem %s1440_s27, 512  ;;  %p1442_p1 = scmp.lt.s32.totalorder %s1775_s16, %s1440_s27 }
  0x1f   : > { %453 = vperm.xlu1 %1414, %v424_v3   ;;  %435 = vperm.xlu0 %1413, %v424_v3  }
  0x23   : > { %1416 = vset.pattern.permute.xlu1 %v1517_v4  ;;  %1415 = vset.pattern.permute.xlu0 %v1517_v4 }
  0x24   : > { %471 = vperm.xlu1 %1416, %v424_v3   ;;  %467 = vperm.xlu0 %1415, %v423_v2  }
  0x28   : > { %1417 = vset.pattern.permute.xlu1 %v1516_v1 }
  0x9a   : > { %v450_v11 = vpop.permute.xlu1 %449  ;;  %v431_v13 = vpop.permute.xlu0 %430 }
  0x9b   : > { %v460_v15 = vsub.f32 %v450_v11, %v459_v10  ;;  %v442_v16 = vsub.f32 %v431_v13, %v441_v12 }
  0x9d   : > { %v462_v22 = vmul.f32 %v460_v15, %v460_v15  ;;  %v444_v23 = vmul.f32 %v442_v16, %v442_v16 }
  0x9e   : > { %v454_v17 = vpop.permute.xlu1 %453  ;;  %v436_v18 = vpop.permute.xlu0 %435 }
  0x9f   : > { %v461_v19 = vsub.f32 %v454_v17, %v459_v10  ;;  %v443_v20 = vsub.f32 %v436_v18, %v441_v12  ;;  %v464_v30 = vadd.f32 %v462_v22, %v444_v23 }
  0xa1   : > { %v463_v24 = vmul.f32 %v461_v19, %v461_v19  ;;  %v445_v25 = vmul.f32 %v443_v20, %v443_v20 }
  0xa3   : > { %v472_v26 = vpop.permute.xlu1 %471  ;;  %v468_v27 = vpop.permute.xlu0 %467  ;;  %v465_v31 = vadd.f32 %v463_v24, %v445_v25 }
  0xa4   : > { %v479_v28 = vsub.f32 %v472_v26, %v477_v21  ;;  %v478_v29 = vsub.f32 %v468_v27, %v477_v21 }
  0xa6   : > { %v481_v32 = vmul.f32 %v479_v28, %v479_v28  ;;  %v480_v33 = vmul.f32 %v478_v29, %v478_v29 }
  0xa8   : > { %v483_v34 = vadd.f32 %v481_v32, %v465_v31  ;;  %v482_v35 = vadd.f32 %v480_v33, %v464_v30 }
  0xaa   : > { %v490_v36 = vsel %vm486_vm0, %v483_v34, inf  ;;  %v487_v37 = vsel %vm486_vm0, %v482_v35, inf }
  0xab   : > { %491 = vmin.xlane.f32.xlu0 %v490_v36  ;;  %488 = vmin.xlane.f32.xlu1 %v487_v37 }
 0x138   : > { %v1656_v39 = vpop.xlane.xlu1 %488  ;;  %v1658_v40 = vpop.xlane.xlu0 %491 }
 0x139   : > { %vm493_vm1 = vcmp.eq.f32.partialorder %v482_v35, %v1656_v39  ;;  %vm494_vm2 = vcmp.eq.f32.partialorder %v483_v34, %v1658_v40  ;;  %v529_v28 = vadd.f32 1e-08, %v1656_v39  ;;  %v530_v29 = vadd.f32 1e-08, %v1658_v40 }
 0x13a   : > { %v495_v41 = vsel %vm493_vm1, %v1654_v38, 8  ;;  %v496_v42 = vsel %vm494_vm2, %v1654_v38, 8  ;;  %vm1519_vm2 = vmmov 0  }
 0x13b   : > { %v497_v43 = vsel %vm486_vm0, %v495_v41, 2147483647  ;;  %v512_v44 = vsel %vm486_vm0, %v496_v42, 2147483647  ;;  %1419 = vrcp.f32 %v529_v28 }
 0x13c   : > { %v499_v45 = vshra.s32 %v497_v43, 16  ;;  %v514_v46 = vshra.s32 %v512_v44, 16  ;;  %v513_v49 = vand.u32 65535, %v512_v44  ;;  %v498_v50 = vand.u32 65535, %v497_v43 }
 0x13d   : > { %1421 = vrcp.f32 %v530_v29 }
 0x13e   : > { %v501_v47 = vcvt.s32.f32 %v499_v45  ;;  %v516_v48 = vcvt.s32.f32 %v514_v46  ;;  %v515_v53 = vcvt.s32.f32 %v513_v49  ;;  %v500_v54 = vcvt.s32.f32 %v498_v50 }
 0x140   : > { %502 = vmin.xlane.f32.xlu0 %v501_v47  ;;  %517 = vmin.xlane.f32.xlu1 %v516_v48 }
 0x145   : > { %v1420_v43 = vpop.eup %1419 }
 0x147   : > { %v1422_v44 = vpop.eup %1421 }
 0x1cd   : > { %v518_v51 = vpop.xlane.xlu1 %517  ;;  %v503_v52 = vpop.xlane.xlu0 %502 }
 0x1ce   : > { %vm519_vm3 = vcmp.eq.f32.partialorder %v516_v48, %v518_v51  ;;  %vm504_vm4 = vcmp.eq.f32.partialorder %v501_v47, %v503_v52  ;;  %v524_v57 = vcvt.f32.s32 %v518_v51  ;;  %v509_v58 = vcvt.f32.s32 %v503_v52 }
 0x1cf   : > { %v520_v55 = vsel %vm519_vm3, %v515_v53, inf  ;;  %v505_v56 = vsel %vm504_vm4, %v500_v54, inf  ;;  %vm792_vm3 = vcmask 1043456   ;;  %vm779_vm4 = vcmask 31744  }
 0x1d0   : > { %521 = vmin.xlane.f32.xlu1 %v520_v55  ;;  %506 = vmin.xlane.f32.xlu0 %v505_v56  ;;  %v525_v61 = vshll.u32 %v524_v57, 16  ;;  %v510_v62 = vshll.u32 %v509_v58, 16 }
 0x25d   : > { %v522_v59 = vpop.xlane.xlu1 %521  ;;  %v507_v60 = vpop.xlane.xlu0 %506 }
 0x25e   : > { %v523_v63 = vcvt.f32.s32 %v522_v59  ;;  %v508_v0 = vcvt.f32.s32 %v507_v60 }
 0x260   : > { %v526_v2 = vadd.s32 %v525_v61, %v523_v63  ;;  %v511_v3 = vadd.s32 %v510_v62, %v508_v0 }
 0x262   : > { %vm528_vm5 = vcmp.eq.s32.totalorder %v1654_v38, %v526_v2  ;;  %vm527_vm6 = vcmp.eq.s32.totalorder %v1654_v38, %v511_v3 }
 0x263   : > { %v542_v4 = vsel %vm528_vm5, 1e+30, %v483_v34  ;;  %v541_v5 = vsel %vm527_vm6, 1e+30, %v482_v35  ;;  %v536_v47 = vsel %vm528_vm5, %v1422_v44, 0.0  ;;  %v535_v48 = vsel %vm527_vm6, %v1420_v43, 0.0 }
 0x264   : > { %v546_v7 = vsel %vm486_vm0, %v542_v4, inf  ;;  %v543_v9 = vsel %vm486_vm0, %v541_v5, inf }
 0x265   : > { %547 = vmin.xlane.f32.xlu1 %v546_v7  ;;  %544 = vmin.xlane.f32.xlu0 %v543_v9 }
 0x2f2   : > { %v548_v10 = vpop.xlane.xlu1 %547  ;;  %v545_v11 = vpop.xlane.xlu0 %544 }
 0x2f3   : > { %vm550_vm7 = vcmp.eq.f32.partialorder %v542_v4, %v548_v10  ;;  %vm549_vm8 = vcmp.eq.f32.partialorder %v541_v5, %v545_v11  ;;  %v586_v30 = vadd.f32 1e-08, %v548_v10  ;;  %v585_v31 = vadd.f32 1e-08, %v545_v11 }
 0x2f4   : > { %v552_v12 = vsel %vm550_vm7, %v1654_v38, 8  ;;  %v551_v13 = vsel %vm549_vm8, %v1654_v38, 8  ;;  %vm1336_vm7 = vmpackc.low %vm486_vm0, %vm486_vm0  ;;  %vm881_vm8 = vcmask 48128  }
 0x2f5   : > { %v568_v14 = vsel %vm486_vm0, %v552_v12, 2147483647  ;;  %v553_v15 = vsel %vm486_vm0, %v551_v13, 2147483647  ;;  %1423 = vrcp.f32 %v586_v30 }
 0x2f6   : > { %v570_v16 = vshra.s32 %v568_v14, 16  ;;  %v555_v17 = vshra.s32 %v553_v15, 16  ;;  %v569_v20 = vand.u32 65535, %v568_v14  ;;  %v554_v21 = vand.u32 65535, %v553_v15 }
 0x2f7   : > { %1425 = vrcp.f32 %v585_v31 }
 0x2f8   : > { %v572_v18 = vcvt.s32.f32 %v570_v16  ;;  %v557_v19 = vcvt.s32.f32 %v555_v17  ;;  %v571_v24 = vcvt.s32.f32 %v569_v20  ;;  %v556_v25 = vcvt.s32.f32 %v554_v21 }
 0x2f9   : > { %v1518_v16 = vmov 0.0|0.0   ;;  %v1520_v17 = vmov 0.0  }
 0x2fa   : > { %573 = vmin.xlane.f32.xlu1 %v572_v18  ;;  %558 = vmin.xlane.f32.xlu0 %v557_v19 }
 0x2fb   : > { %1334 = vmatprep.subr.bf16.mxu0 %v1518_v16  ;;  %1304 = vmatprep.mubr.msk.f32.mxu0 %vm1519_vm2, %v1520_v17  ;;  %v1016_v17 = vld [vmem:[%s1835_s7 + $0x8] sm:$0xff] }
 0x2ff   : > { %v1424_v46 = vpop.eup %1423 }
 0x301   : > { %v1426_v40 = vpop.eup %1425 }
 0x387   : > { %v574_v22 = vpop.xlane.xlu1 %573  ;;  %v559_v23 = vpop.xlane.xlu0 %558 }
 0x388   : > { %vm575_vm9 = vcmp.eq.f32.partialorder %v572_v18, %v574_v22  ;;  %vm560_vm10 = vcmp.eq.f32.partialorder %v557_v19, %v559_v23  ;;  %v580_v32 = vcvt.f32.s32 %v574_v22  ;;  %v565_v33 = vcvt.f32.s32 %v559_v23  ;;  %v775_v22 = vld [vmem:[%s1833_s5] sm:$0xff] }
 0x389   : > { %v576_v26 = vsel %vm575_vm9, %v571_v24, inf  ;;  %v561_v27 = vsel %vm560_vm10, %v556_v25, inf  ;;  %v595_v19 = vadd.f32 %v1426_v40, %v1420_v43  ;;  %v596_v23 = vadd.f32 %v1424_v46, %v1422_v44  ;;  %v426_v24 = vld [vmem:[%s418_s24] sm:$0xf]  ;;  %1309 = vmatprep.mubr.msk.f32.mxu1 %vm779_vm4, %v775_v22  ;;  %v776_v25 = vld [vmem:[%s1833_s5 + $0x8] sm:$0xff] }
 0x38a   : > { %577 = vmin.xlane.f32.xlu1 %v576_v26  ;;  %562 = vmin.xlane.f32.xlu0 %v561_v27  ;;  %v581_v36 = vshll.u32 %v580_v32, 16  ;;  %v566_v37 = vshll.u32 %v565_v33, 16  ;;  %vm1029_vm9 = vcmask 261120   ;;  %vm1113_vm10 = vcmask 130048  }
 0x38b   : > { %1307 = vmatprep.subr.msk.mxu1 %vm792_vm3, %v426_v24 }
 0x38c   : > { %1308 = vmatpush3.msk.msra.mxu1 %vm792_vm3, %v426_v24 }
 0x38d   : > { %1310 = vmatmul.mubr.msk.f32.vlgmr.msra.gmra.mrb[0].mxu1 %vm779_vm4, %v776_v25 }
 0x417   : > { %v578_v34 = vpop.xlane.xlu1 %577  ;;  %v563_v35 = vpop.xlane.xlu0 %562 }
 0x418   : > { %v579_v41 = vcvt.f32.s32 %v578_v34  ;;  %v564_v42 = vcvt.f32.s32 %v563_v35 }
 0x41a   : > { %v582_v45 = vadd.s32 %v581_v36, %v579_v41  ;;  %v567_v39 = vadd.s32 %v566_v37, %v564_v42 }
 0x41c   : > { %vm584_vm11 = vcmp.eq.s32.totalorder %v1654_v38, %v582_v45  ;;  %vm583_vm12 = vcmp.eq.s32.totalorder %v1654_v38, %v567_v39  ;;  %v427_v39 = vld [vmem:[%s422_s18] sm:$0x3f]  ;;  %s1280_s18 = sshll.u32 %s1505_s12, 8  ;;  %s1435_s12 = scalar_lea.vmem %s1775_s16, 256 }
 0x41d   : > { %v598_v49 = vsel %vm584_vm11, 1e+30, %v542_v4  ;;  %v592_v50 = vsel %vm584_vm11, %v1424_v46, 0.0  ;;  %v597_v51 = vsel %vm583_vm12, 1e+30, %v541_v5  ;;  %v591_v52 = vsel %vm583_vm12, %v1426_v40, 0.0  ;;  %s1780_s25 = scalar_lea.hbm %s1837_s9, %s1280_s18  ;;  %p1436_p12 = scmp.ne.s32.totalorder %s1775_s16, %s1435_s12 }
 0x41e   : > { %v602_v53 = vsel %vm486_vm0, %v598_v49, inf  ;;  %v1687_v54 = vadd.f32 %v592_v50, %v536_v47  ;;  %v599_v55 = vsel %vm486_vm0, %v597_v51, inf  ;;  %v1690_v56 = vadd.f32 %v591_v52, %v535_v48  ;;  %v778_v46 = vld [vmem:[%s1833_s5 + $0x18] sm:$0xff]  ;;  %v771_v40 = vld [vmem:[%s1832_s4] sm:$0xff]  ;;  %v984_v48 = vld [vmem:[%s1834_s6 + $0x8] sm:$0xff]  ;;  %p1443_p2 = scmp.lt.s32.totalorder %s1441_s28, %s1435_s12 }
 0x41f   : > { %603 = vmin.xlane.f32.xlu1 %v602_v53  ;;  %600 = vmin.xlane.f32.xlu0 %v599_v55  ;;  %v983_v47 = vld [vmem:[%s1834_s6] sm:$0xff]  ;;  %v986_v50 = vld [vmem:[%s1834_s6 + $0x18] sm:$0xff]  ;;  %v1018_v52 = vld [vmem:[%s1836_s8 + $0x8] sm:$0xff]  ;;  %p1437_p13 = pnand %p1436_p12, %p1614_p4 }
 0x420   : > { %p1444_p3 = por %p1443_p2, %p1442_p1 }
 0x421   : > { %p1438_p0 = pneg %p1437_p13 }
 0x423   : > { %p1445_p5 = pnand %p1444_p3, %p1438_p0 }
 0x4ac   : > { %v604_v57 = vpop.xlane.xlu1 %603  ;;  %v601_v58 = vpop.xlane.xlu0 %600 }
 0x4ad   : > { %vm606_vm13 = vcmp.eq.f32.partialorder %v598_v49, %v604_v57  ;;  %vm605_vm14 = vcmp.eq.f32.partialorder %v597_v51, %v601_v58  ;;  %v641_v14 = vadd.f32 1e-08, %v601_v58  ;;  %v642_v15 = vadd.f32 1e-08, %v604_v57  ;;  %v985_v49 = vld [vmem:[%s1834_s6 + $0x10] sm:$0xff]  ;;  %v1017_v51 = vld [vmem:[%s1836_s8] sm:$0xff] }
 0x4ae   : > { %v608_v59 = vsel %vm606_vm13, %v1654_v38, 8  ;;  %v607_v60 = vsel %vm605_vm14, %v1654_v38, 8  ;;  %v772_v58 = vld [vmem:[%s1832_s4 + $0x8] sm:$0xff] }
 0x4af   : > { %v624_v61 = vsel %vm486_vm0, %v608_v59, 2147483647  ;;  %v609_v62 = vsel %vm486_vm0, %v607_v60, 2147483647  ;;  %1427 = vrcp.f32 %v641_v14  ;;  %v773_v59 = vld [vmem:[%s1832_s4 + $0x10] sm:$0xff] }
 0x4b0   : > { %v626_v63 = vshra.s32 %v624_v61, 16  ;;  %v611_v0 = vshra.s32 %v609_v62, 16  ;;  %v625_v4 = vand.u32 65535, %v624_v61  ;;  %v610_v5 = vand.u32 65535, %v609_v62 }
 0x4b1   : > { %1429 = vrcp.f32 %v642_v15 }
 0x4b2   : > { %v628_v2 = vcvt.s32.f32 %v626_v63  ;;  %v613_v3 = vcvt.s32.f32 %v611_v0  ;;  %v627_v10 = vcvt.s32.f32 %v625_v4  ;;  %v612_v11 = vcvt.s32.f32 %v610_v5 }
 0x4b4   : > { %629 = vmin.xlane.f32.xlu1 %v628_v2  ;;  %614 = vmin.xlane.f32.xlu0 %v613_v3 }
 0x4b9   : > { %v1428_v18 = vpop.eup %1427 }
 0x4ba   : > { %v651_v20 = vadd.f32 %v1428_v18, %v595_v19 }
 0x4bb   : > { %v1430_v21 = vpop.eup %1429 }
 0x4bc   : > { %v652_v26 = vadd.f32 %v1430_v21, %v596_v23  ;;  %1431 = vrcp.f32 %v651_v20 }
 0x4be   : > { %1433 = vrcp.f32 %v652_v26 }
 0x4c6   : > { %v1432_v27 = vpop.eup %1431 }
 0x4c8   : > { %v1434_v28 = vpop.eup %1433 }
 0x541   : > { %v630_v7 = vpop.xlane.xlu1 %629  ;;  %v615_v9 = vpop.xlane.xlu0 %614 }
 0x542   : > { %vm631_vm15 = vcmp.eq.f32.partialorder %v628_v2, %v630_v7  ;;  %vm616_vm1 = vcmp.eq.f32.partialorder %v613_v3, %v615_v9  ;;  %v636_v29 = vcvt.f32.s32 %v630_v7  ;;  %v621_v30 = vcvt.f32.s32 %v615_v9 }
 0x543   : > { %v632_v12 = vsel %vm631_vm15, %v627_v10, inf  ;;  %v617_v13 = vsel %vm616_vm1, %v612_v11, inf }
 0x544   : > { %633 = vmin.xlane.f32.xlu1 %v632_v12  ;;  %618 = vmin.xlane.f32.xlu0 %v617_v13  ;;  %v637_v33 = vshll.u32 %v636_v29, 16  ;;  %v622_v34 = vshll.u32 %v621_v30, 16 }
 0x555   : > { %989 = vperm.xlu1 %1417, %v983_v47  }
 0x559   : > { %994 = vperm.xlu1 %1417, %v984_v48  }
 0x55d   : > { %999 = vperm.xlu1 %1417, %v985_v49  }
 0x561   : > { %1004 = vperm.xlu1 %1417, %v986_v50  }
 0x565   : > { %1021 = vperm.xlu1 %1417, %v1017_v51  }
 0x569   : > { %1026 = vperm.xlu1 %1417, %v1018_v52  }
 0x571   : > { %734 = vxpose.xlu0.b32.start [1/2] (short) (narrow) %v1432_v27, 8 }
 0x575   : > { %735 = vxpose.xlu0.b32.end [2/2] (short) (narrow) %v1434_v28, 8 }
 0x59e   : > { %1418 = vset.pattern.permute.xlu0 %v1516_v1 }
 0x5d1   : > { %v634_v31 = vpop.xlane.xlu1 %633  ;;  %v619_v32 = vpop.xlane.xlu0 %618 }
 0x5d2   : > { %v635_v35 = vcvt.f32.s32 %v634_v31  ;;  %v620_v36 = vcvt.f32.s32 %v619_v32 }
 0x5d4   : > { %v638_v37 = vadd.s32 %v637_v33, %v635_v35  ;;  %v623_v41 = vadd.s32 %v622_v34, %v620_v36 }
 0x5d5   : > { %v990_v60 = vpop.permute.xlu1 %989 }
 0x5d6   : > { %vm640_vm5 = vcmp.eq.s32.totalorder %v1654_v38, %v638_v37  ;;  %vm639_vm6 = vcmp.eq.s32.totalorder %v1654_v38, %v623_v41  ;;  %v777_v38 = vld [vmem:[%s1833_s5 + $0x10] sm:$0xff] }
 0x5d7   : > { %v648_v42 = vsel %vm640_vm5, %v1430_v21, 0.0  ;;  %v647_v43 = vsel %vm639_vm6, %v1428_v18, 0.0  ;;  %1312 = vmatprep.mubr.msk.f32.mxu1 %vm779_vm4, %v777_v38 }
 0x5d8   : > { %v649_v44 = vadd.f32 %v647_v43, %v1690_v56  ;;  %v650_v1 = vadd.f32 %v648_v42, %v1687_v54  ;;  %1313 = vmatmul.mubr.msk.f32.gmra.mrb[2].mxu1 %vm779_vm4, %v778_v46 }
 0x5d9   : > { %1317 = vmatprep.mubr.msk.f32.mxu1 %vm881_vm8, %v771_v40  ;;  %v995_v61 = vpop.permute.xlu1 %994 }
 0x5da   : > { %v1335_v45 = vpack.c.bf16 %v650_v1, %v649_v44 }
 0x5dc   : > { %1337 = vmatpush3.bf16.xpose.msk.msra.mxu0 %vm1336_vm7, %v1335_v45 }
 0x5dd   : > { %v1000_v62 = vpop.permute.xlu1 %999 }
 0x5e1   : > { %v1005_v5 = vpop.permute.xlu1 %1004 }
 0x5e3   : > { %1305 = vmatmul.mubr.msk.f32.vlgmr.msra.gmra.mrb[0].mxu0 %vm486_vm0, %v427_v39  ;;  %vm894_vm0 = vcmask 1045504  }
 0x5e5   : > { %v1022_v18 = vpop.permute.xlu1 %1021 }
 0x5e9   : > { %v1027_v19 = vpop.permute.xlu1 %1026 }
 0x5f1   : > { %v750_v53 = vpop.trf.xlu0 }
 0x5f2   : > { %v769_v54 = vrot.slane %v750_v53, %v440_v8  ;;  %v1015_v8 = vld [vmem:[%s1835_s7] sm:$0xff] }
 0x5f3   : > { %1331 = vmatprep.mubr.msk.f32.mxu0 %vm1029_vm9, %v1015_v8 }
 0x6b6   : > { %v730_v55 = vpop.f32.mrb[0].mxu0 }
 0x6b7   : > { %v770_v56 = vmul.f32 %v769_v54, %v730_v55  ;;  %v1306_v57 = vpop.f32.mrb[1].mxu0 }
 0x6b9   : > { %1315 = vmatprep.subr.msk.mxu1 %vm894_vm0, %v770_v56 }
 0x6ba   : > { %1316 = vmatpush3.msk.msra.mxu1 %vm894_vm0, %v770_v56 }
 0x6bb   : > { %1318 = vmatmul.mubr.msk.f32.vlgmr.msra.gmra.mrb[0].mxu1 %vm881_vm8, %v772_v58 }
 0x6bc   : > { %1320 = vmatprep.mubr.msk.f32.mxu1 %vm881_vm8, %v773_v59 }
 0x6bf   : > { %1321 = vmatmul.mubr.msk.f32.gmra.mrb[2].mxu1 %vm881_vm8, %v774_v6 }
 0x78e   : > { %v1319_v63 = vpop.f32.mrb[0].mxu1 }
 0x78f   : > { %v1008_v0 = vadd.f32 %v1319_v63, %v995_v61  ;;  %v964_v2 = vpop.f32.mrb[1].mxu1 }
 0x790   : > { %v1007_v3 = vadd.f32 %v990_v60, %v964_v2 }
 0x791   : > { %v1012_v4 = vmax.f32 %v1008_v0, 0.0 }
 0x792   : > { %v1011_v7 = vmax.f32 %v1007_v3, 0.0  ;;  %v1322_v9 = vpop.f32.mrb[2].mxu1 }
 0x793   : > { %v1010_v10 = vadd.f32 %v1322_v9, %v1005_v5  ;;  %v974_v11 = vpop.f32.mrb[3].mxu1 }
 0x794   : > { %v1338_v12 = vpack.c.bf16 %v1012_v4, %v1011_v7  ;;  %v1009_v13 = vadd.f32 %v1000_v62, %v974_v11 }
 0x795   : > { %v1014_v14 = vmax.f32 %v1010_v10, 0.0 }
 0x796   : > { %v1013_v15 = vmax.f32 %v1009_v13, 0.0  ;;  %1339 = vmatprep.subr.bf16.mxu0 %v1338_v12 }
 0x797   : > { %1341 = vmatpush3.bf16.msra.mxu0 %v1338_v12 }
 0x798   : > { %v1342_v16 = vpack.c.bf16 %v1014_v14, %v1013_v15 }
 0x79a   : > { %1343 = vmatprep.subr.bf16.mxu0 %v1342_v16 }
 0x79b   : > { %1345 = vmatpush3.bf16.msra.mxu0 %v1342_v16 }
 0x79e   : > { %1332 = vmatmul.mubr.msk.f32.vlgmr.msra.gmra.mrb[2].mxu0 %vm1029_vm9, %v1016_v17 }
 0x871   : > { %v1333_v20 = vpop.f32.mrb[2].mxu0 }
 0x872   : > { %v1108_v21 = vadd.f32 %v1333_v20, %v1027_v19  ;;  %v1102_v22 = vpop.f32.mrb[3].mxu0 }
 0x873   : > { %v1103_v23 = vadd.f32 %v1102_v22, %v1022_v18 }
 0x874   : > { %v1112_v24 = vmax.f32 %v1108_v21, 0.0 }
 0x875   : > { %v1111_v25 = vmax.f32 %v1103_v23, 0.0 }
 0x876   : > { %1115 = vst.msk [vmem:[%s397_s15 + $0x8] sm:$0xff] %vm1113_vm10, %v1112_v24 }
 0x877   : > { %1114 = vst.msk [vmem:[%s397_s15] sm:$0xff] %vm1113_vm10, %v1111_v25 }
 0x878   : > { %1448 = shalt.err (!%p1445_p5)
}
 0x879   : > { %s1449_s29 = scalar_lea.hbm %s1780_s25, 256  ;;  %s1453_s20 = scalar_lea.hbm %s1837_s9, 512 }
 0x87a   : > { %p1450_p6 = scmp.ne.s32.totalorder %s1780_s25, %s1449_s29  ;;  %p1454_p10 = scmp.lt.u32.totalorder %s1780_s25, %s1837_s9 }
 0x87b   : > { %p1455_p11 = scmp.lt.u32.totalorder %s1453_s20, %s1449_s29  ;;  %p1457_p13 = scmp.lt.u32.totalorder %s1449_s29, %s1780_s25 }
 0x87c   : > { %p1451_p7 = pnand %p1450_p6, %p1614_p4 }
 0x87d   : > { %p1456_p12 = por %p1455_p11, %p1454_p10 }
 0x87e   : > { %p1452_p9 = pneg %p1451_p7 }
 0x87f   : > { %p1458_p0 = por %p1457_p13, %p1456_p12 }
 0x881   : > { %p1459_p1 = pnand %p1458_p0, %p1452_p9 }
 0x883   : > { %1462 = shalt.err (!%p1459_p1)
}
 0x884   : > { %s1522_s12 = smov 128   ;;  %s1523_s27 = smov 8  }
 0x885   : > { %1350 = dma.vmem_to_hbm [thread:$0]  (%p1614_p4), %s1775_s16, 256, %s1780_s25, %s1782_s26, %s1522_s12, %s1522_s12, %s1523_s27  }
 0x886 PF: > { %p1356_p2 = scmp.ge.s32.totalorder %s1513_s14, 2  ;;  %s1146_s28 = sand.u32 1, %s1493_s30  }
 0x887   : > { %s1147_s29 = scalar_lea.sflag [#allocation3], %s1146_s28 }
 0x888   : > { %p1353_p3 = pnand %p1356_p2, %p1621_p8 }
 0x88a   : > { %1488 = dma.done.wait (!%p1353_p3), %s1147_s29, 256  }
 0x88b   : > { %1490 = vsyncadd (!%p1353_p3), %s1147_s29, 4294967040  ;;  %s22_s14 = sadd.s32 1, %s1513_s14   ;;  %s1840_s30 = smov %s1497_s10 }
 0x88c   : > { %p19_p5 = scmp.ge.s32.totalorder %s22_s14, 4   ;;  %s1841_s10 = smov %s1501_s11 }
 0x88d   : > { %s1842_s11 = smov %s1627_s22  ;;  %s1843_s12 = smov %s1509_s13 }
 0x88e   : > { %s1844_s13 = smov %s1846_s17  ;;  %21 = sbr.rel (!%p19_p5) target bundleno = 4 (0x4), region = 100 }
 0x895   :  { %1152 = vsyncpa [#allocation3], 1 }
 0x896   :  { %1154 = vsyncpa [#allocation3 + $0x1], 1 }

</bundles_post_ra>
